<compile_context>
chip_gen: v7x
topology: tpu7x:2x2x1
jax: 0.10.0
libtpu: 0.0.40
codegen_flags: <defaults>
</compile_context>

<pallas_src>
import functools

import jax
import jax.numpy as jnp
from jax.experimental import pallas as pl
from jax.experimental.pallas import tpu as pltpu


def _ceil_to(x, m):
    return ((x + m - 1) // m) * m


def _sge_kernel(wb_ref, x_ref, o_ref, *, inv_hm1):
    """One block of rows; each row is one (batch, group) pair.

    wb_ref : (TB, 1, 2) f32   — [..., 0] = weight, [..., 1] = bias
    x_ref  : (TB, cpg, H)     — native dtype (f32 or bf16)
    o_ref  : (TB, cpg, H)     — native dtype

    All math stays in the natural (outer, sublane, lane) 3-D layout: the
    avg-pool is a lane reduce, the channel sum a sublane reduce, and the gate
    broadcasts along existing size-1 axes — no sublane<->outer relayouts.
    """
    # f32 values are used only for the statistics stage; the gating stage
    # below re-reads the native-dtype input buffer instead of keeping a full
    # f32 copy of the block live across the whole kernel.
    xf = x_ref[...].astype(jnp.float32)                      # (TB, cpg, H)

    # AdaptiveAvgPool1d(1) per channel, then weighted channel sum.
    pooled = jnp.mean(xf, axis=-1, keepdims=True)            # (TB, cpg, 1)
    t = jnp.sum(xf * pooled, axis=1, keepdims=True)          # (TB, 1, H)

    # Standardize over H per row (torch.std is unbiased: divide by H-1).
    t_mean = jnp.mean(t, axis=-1, keepdims=True)             # (TB, 1, 1)
    tc = t - t_mean
    var = jnp.sum(tc * tc, axis=-1, keepdims=True) * inv_hm1
    std = jnp.sqrt(var) + 1e-5
    tn = tc * pl.reciprocal(std, approx=False)                # (TB, 1, H)

    # Per-(batch, group) affine + sigmoid gate; cast the gate once to the
    # native dtype so the gating multiply runs in bf16 on v6e/v7x.
    wb = wb_ref[...]                                          # (TB, 1, 2) f32
    w = wb[:, :, 0:1]                                         # (TB, 1, 1)
    b = wb[:, :, 1:2]                                         # (TB, 1, 1)
    gate = jax.nn.sigmoid(tn * w + b).astype(o_ref.dtype)     # (TB, 1, H)

    # Re-read the native-dtype input and emit one full-width, lane-dense store.
    o_ref[...] = x_ref[...] * gate


def _pick_block_rows(bg, cpg, h, itemsize):
    """Pick the row-block size from the padded VMEM footprint.

    Budget targets ~10 MiB of scoped VMEM so double-buffered in/out blocks,
    the f32 working set and the affine-param blocks stay comfortably under
    v5e's 16 MiB default scoped-VMEM limit (v6e/v7x defaults are 32 MiB).
    """
    sub_native = max(8, 32 // itemsize)          # sublanes per tile: f32→8, bf16→16
    prow_native = _ceil_to(cpg, sub_native) * _ceil_to(h, 128) * itemsize
    prow_f32 = _ceil_to(cpg, 8) * _ceil_to(h, 128) * 4
    wb_row = 8 * 128 * 4                          # (1,2) f32 minor tile pads to (8,128)
    # 2x in + 2x out (native, double-buffered) + ~2x f32 working set + 2x wb.
    per_row = 4 * prow_native + 2 * prow_f32 + 2 * wb_row

    budget = 10 * 1024 * 1024
    tb = max(1, budget // per_row)
    # TODO(synk): if a single row (cpg*H) exceeds the budget even at tb=1, add
    # a channel-chunk grid axis with a two-pass statistic instead.
    tb = min(tb, bg)

    # Keep several grid steps so the "parallel" axis can shard across v7x's
    # two TensorCores (neutral on v5e/v6e: single TensorCore).
    if bg >= 32:
        tb = min(tb, pl.cdiv(bg, 4))
    elif bg >= 16:
        tb = min(tb, pl.cdiv(bg, 2))
    return max(1, int(tb))


def spatial_group_enhance_1d(x, weight, bias, groups, *, block_rows=None):
    """x: (B, C, H); weight, bias: (1, groups, 1). Returns (B, C, H) in x.dtype."""
    B, C, H = x.shape
    assert C % groups == 0, "channels must be divisible by groups"
    assert H >= 2, "unbiased std (torch.std) requires H >= 2"
    cpg = C // groups
    bg = B * groups
    itemsize = jnp.dtype(x.dtype).itemsize

    # Free, layout-preserving view: one row per (batch, group).
    xg = x.reshape(bg, cpg, H)

    # Pack per-(batch, group) weight & bias into one tiny f32 side input.
    w_bg = jnp.broadcast_to(jnp.reshape(weight, (1, groups)), (B, groups)).reshape(bg)
    b_bg = jnp.broadcast_to(jnp.reshape(bias, (1, groups)), (B, groups)).reshape(bg)
    wb = jnp.stack([w_bg, b_bg], axis=-1).astype(jnp.float32).reshape(bg, 1, 2)

    if block_rows is None:
        tb = _pick_block_rows(bg, cpg, H, itemsize)
    else:
        tb = max(1, min(int(block_rows), bg))

    grid = (pl.cdiv(bg, tb),)
    kernel = functools.partial(_sge_kernel, inv_hm1=float(1.0 / (H - 1)))

    out = pl.pallas_call(
        kernel,
        out_shape=jax.ShapeDtypeStruct((bg, cpg, H), x.dtype),
        grid_spec=pltpu.PrefetchScalarGridSpec(
            num_scalar_prefetch=0,
            grid=grid,
            in_specs=[
                pl.BlockSpec((tb, 1, 2), lambda i: (i, 0, 0)),      # weight/bias rows
                pl.BlockSpec((tb, cpg, H), lambda i: (i, 0, 0)),    # x rows
            ],
            out_specs=pl.BlockSpec((tb, cpg, H), lambda i: (i, 0, 0)),
        ),
        compiler_params=pltpu.CompilerParams(
            dimension_semantics=("parallel",),
            vmem_limit_bytes=32 * 1024 * 1024,
        ),
        cost_estimate=pl.CostEstimate(
            flops=int(6 * bg * cpg * H),
            transcendentals=int(bg * H),
            bytes_accessed=int(2 * bg * cpg * H * itemsize + bg * 8),
        ),
    )(wb, xg)

    return out.reshape(B, C, H)


def _reference(x, weight, bias, groups):
    """Pure-JAX reference mirroring the PyTorch forward exactly."""
    B, C, H = x.shape
    xg = x.reshape(B * groups, C // groups, H)
    pooled = jnp.mean(xg, axis=-1, keepdims=True)
    xn = jnp.sum(xg * pooled, axis=1, keepdims=True)             # (bg, 1, H)
    t = xn.reshape(B * groups, H)
    t = t - jnp.mean(t, axis=1, keepdims=True)
    std = jnp.std(t, axis=1, keepdims=True, ddof=1) + 1e-5       # torch.std: unbiased
    t = t / std
    t = t.reshape(B, groups, H)
    t = t * jnp.reshape(weight, (1, groups, 1)) + jnp.reshape(bias, (1, groups, 1))
    t = t.reshape(B * groups, 1, H)
    out = xg * jax.nn.sigmoid(t)
    return out.reshape(B, C, H)


if __name__ == "__main__":
    key = jax.random.PRNGKey(0)
    kx, kw, kb, kx2 = jax.random.split(key, 4)

    # enhance1-like config (smiles branch of DAT_cnn, scaled lstm_dim):
    # (B, seq_len=100, lstm_dim=32), groups=20 -> bg=40, cpg=5, H=32.
    B, GROUPS, C, H = 2, 20, 100, 32
    x = jax.random.normal(kx, (B, C, H), dtype=jnp.float32)
    weight = 0.5 * jax.random.normal(kw, (1, GROUPS, 1), dtype=jnp.float32)
    bias = 1.0 + 0.5 * jax.random.normal(kb, (1, GROUPS, 1), dtype=jnp.float32)

    ref = _reference(x, weight, bias, GROUPS)

    # Auto block size (multi-step grid, full blocks).
    out_auto = jax.block_until_ready(spatial_group_enhance_1d(x, weight, bias, GROUPS))
    # Explicit small block: exercises partial final block (bg % tb != 0).
    out_blk = jax.block_until_ready(
        spatial_group_enhance_1d(x, weight, bias, GROUPS, block_rows=7))

    assert out_auto.shape == (B, C, H) and out_auto.dtype == x.dtype
    assert jnp.allclose(out_auto, ref, atol=1e-5, rtol=1e-5), "auto-block mismatch"
    assert jnp.allclose(out_blk, ref, atol=1e-5, rtol=1e-5), "blocked mismatch"

    # Native-dtype I/O path: bf16 in HBM, f32 stats inside, bf16 gating multiply.
    x16 = x.astype(jnp.bfloat16)
    out16 = jax.block_until_ready(spatial_group_enhance_1d(x16, weight, bias, GROUPS))
    assert out16.dtype == jnp.bfloat16
    ref16 = _reference(x16.astype(jnp.float32), weight, bias, GROUPS)
    assert jnp.allclose(out16.astype(jnp.float32), ref16, atol=5e-2, rtol=5e-2), \
        "bf16 mismatch"

    # enhance2-like config scaled down (protein branch): groups=200, cpg=1 edge
    # case, torch default init (weight=0, bias=1).
    B2, GROUPS2, C2, H2 = 2, 200, 200, 16
    x2 = jax.random.normal(kx2, (B2, C2, H2), dtype=jnp.float32)
    w2 = jnp.zeros((1, GROUPS2, 1), jnp.float32)
    b2 = jnp.ones((1, GROUPS2, 1), jnp.float32)
    ref2 = _reference(x2, w2, b2, GROUPS2)
    out2 = jax.block_until_ready(spatial_group_enhance_1d(x2, w2, b2, GROUPS2))
    assert jnp.allclose(out2, ref2, atol=1e-5, rtol=1e-5), "enhance2-like mismatch"

    print("KERNEL_OK")
</pallas_src>

<mosaic_0001>
module attributes {stable_mosaic.version = 11 : i64} {
  func.func @_sge_kernel(%arg0: i32, %arg1: memref<10x1x2xf32, #tpu.memory_space<vmem>>, %arg2: memref<10x5x32xf32, #tpu.memory_space<vmem>>, %arg3: memref<10x5x32xf32, #tpu.memory_space<vmem>>) attributes {dimension_semantics = [#tpu.dimension_semantics<parallel>], iteration_bounds = array<i64: 4>, scalar_prefetch = 0 : i64, scratch_operands = 0 : i64, tpu.core_type = #tpu.core_type<tc>, window_params = [{transform_indices = @transform_0, window_bounds = array<i64: 10, 1, 2>}, {transform_indices = @transform_1, window_bounds = array<i64: 10, 5, 32>}, {transform_indices = @transform_2, window_bounds = array<i64: 10, 5, 32>}]} {
    %c0 = arith.constant 0 : index
    %c0_0 = arith.constant 0 : index
    %c0_1 = arith.constant 0 : index
    %0 = vector.load %arg2[%c0, %c0_0, %c0_1] : memref<10x5x32xf32, #tpu.memory_space<vmem>>, vector<10x5x32xf32>
    %cst = arith.constant dense<0.000000e+00> : vector<10x5xf32>
    %1 = vector.multi_reduction <add>, %0, %cst [2] : vector<10x5x32xf32> to vector<10x5xf32>
    %2 = vector.shape_cast %1 : vector<10x5xf32> to vector<10x5x1xf32>
    %cst_2 = arith.constant 3.200000e+01 : f32
    %3 = vector.broadcast %cst_2 : f32 to vector<10x5x1xf32>
    %4 = arith.divf %2, %3 : vector<10x5x1xf32>
    %5 = vector.broadcast %4 : vector<10x5x1xf32> to vector<10x5x32xf32>
    %6 = arith.mulf %0, %5 : vector<10x5x32xf32>
    %cst_3 = arith.constant dense<0.000000e+00> : vector<10x32xf32>
    %7 = vector.multi_reduction <add>, %6, %cst_3 [1] : vector<10x5x32xf32> to vector<10x32xf32>
    %8 = vector.shape_cast %7 : vector<10x32xf32> to vector<10x1x32xf32>
    %cst_4 = arith.constant dense<0.000000e+00> : vector<10x1xf32>
    %9 = vector.multi_reduction <add>, %8, %cst_4 [2] : vector<10x1x32xf32> to vector<10x1xf32>
    %10 = vector.shape_cast %9 : vector<10x1xf32> to vector<10x1x1xf32>
    %cst_5 = arith.constant 3.200000e+01 : f32
    %11 = vector.broadcast %cst_5 : f32 to vector<10x1x1xf32>
    %12 = arith.divf %10, %11 : vector<10x1x1xf32>
    %13 = vector.broadcast %12 : vector<10x1x1xf32> to vector<10x1x32xf32>
    %14 = arith.subf %8, %13 : vector<10x1x32xf32>
    %15 = arith.mulf %14, %14 : vector<10x1x32xf32>
    %cst_6 = arith.constant dense<0.000000e+00> : vector<10x1xf32>
    %16 = vector.multi_reduction <add>, %15, %cst_6 [2] : vector<10x1x32xf32> to vector<10x1xf32>
    %17 = vector.shape_cast %16 : vector<10x1xf32> to vector<10x1x1xf32>
    %cst_7 = arith.constant 0.0322580636 : f32
    %18 = vector.broadcast %cst_7 : f32 to vector<10x1x1xf32>
    %19 = arith.mulf %17, %18 : vector<10x1x1xf32>
    %20 = math.sqrt %19 : vector<10x1x1xf32>
    %cst_8 = arith.constant 9.99999974E-6 : f32
    %21 = vector.broadcast %cst_8 : f32 to vector<10x1x1xf32>
    %22 = arith.addf %20, %21 : vector<10x1x1xf32>
    %23 = tpu.reciprocal %22 : vector<10x1x1xf32> -> vector<10x1x1xf32>
    %24 = vector.broadcast %23 : vector<10x1x1xf32> to vector<10x1x32xf32>
    %25 = arith.mulf %14, %24 : vector<10x1x32xf32>
    %c0_9 = arith.constant 0 : index
    %c0_10 = arith.constant 0 : index
    %c0_11 = arith.constant 0 : index
    %26 = vector.load %arg1[%c0_9, %c0_10, %c0_11] : memref<10x1x2xf32, #tpu.memory_space<vmem>>, vector<10x1x2xf32>
    %27 = vector.extract_strided_slice %26 {offsets = [0, 0, 0], sizes = [10, 1, 1], strides = [1, 1, 1]} : vector<10x1x2xf32> to vector<10x1x1xf32>
    %28 = vector.extract_strided_slice %26 {offsets = [0, 0, 1], sizes = [10, 1, 1], strides = [1, 1, 1]} : vector<10x1x2xf32> to vector<10x1x1xf32>
    %29 = vector.broadcast %27 : vector<10x1x1xf32> to vector<10x1x32xf32>
    %30 = arith.mulf %25, %29 : vector<10x1x32xf32>
    %31 = vector.broadcast %28 : vector<10x1x1xf32> to vector<10x1x32xf32>
    %32 = arith.addf %30, %31 : vector<10x1x32xf32>
    %33 = arith.negf %32 : vector<10x1x32xf32>
    %34 = math.exp %33 : vector<10x1x32xf32>
    %cst_12 = arith.constant 1.000000e+00 : f32
    %35 = vector.broadcast %cst_12 : f32 to vector<10x1x32xf32>
    %36 = arith.addf %35, %34 : vector<10x1x32xf32>
    %37 = arith.divf %35, %36 : vector<10x1x32xf32>
    %c0_13 = arith.constant 0 : index
    %c0_14 = arith.constant 0 : index
    %c0_15 = arith.constant 0 : index
    %38 = vector.load %arg2[%c0_13, %c0_14, %c0_15] : memref<10x5x32xf32, #tpu.memory_space<vmem>>, vector<10x5x32xf32>
    %39 = vector.broadcast %37 : vector<10x1x32xf32> to vector<10x5x32xf32>
    %40 = arith.mulf %38, %39 : vector<10x5x32xf32>
    %c0_16 = arith.constant 0 : index
    %c0_17 = arith.constant 0 : index
    %c0_18 = arith.constant 0 : index
    %41 = vector.load %arg3[%c0_16, %c0_17, %c0_18] : memref<10x5x32xf32, #tpu.memory_space<vmem>>, vector<10x5x32xf32>
    tpu.vector_store %arg3[%c0_16, %c0_17, %c0_18], %40 {strides = array<i32>} : memref<10x5x32xf32, #tpu.memory_space<vmem>>, vector<10x5x32xf32>,
    return
  }
  func.func @transform_0(%arg0: i32) -> (i32, i32, i32) {
    %c0_i32 = arith.constant 0 : i32
    %c0_i32_0 = arith.constant 0 : i32
    %c0_i32_1 = arith.constant 0 : i32
    return %arg0, %c0_i32, %c0_i32_0 : i32, i32, i32
  }
  func.func @transform_1(%arg0: i32) -> (i32, i32, i32) {
    %c0_i32 = arith.constant 0 : i32
    %c0_i32_0 = arith.constant 0 : i32
    %c0_i32_1 = arith.constant 0 : i32
    return %arg0, %c0_i32, %c0_i32_0 : i32, i32, i32
  }
  func.func @transform_2(%arg0: i32) -> (i32, i32, i32) {
    %c0_i32 = arith.constant 0 : i32
    %c0_i32_0 = arith.constant 0 : i32
    %c0_i32_1 = arith.constant 0 : i32
    return %arg0, %c0_i32, %c0_i32_0 : i32, i32, i32
  }
}

</mosaic_0001>

<bundles_post_ra>
// kernel: tpu_custom_call.1
= control target key start
LH: loop header
LB: loop body
LE: loop exit
PB: predicated region body
PF: predicated region fallthrough
CT: control target
= control target key end

     0   :  { %s982_s9 = smov 0   ;;  %s1334_s0 = inlined_call_operand.vmem [shape: f32[40,1,2], index: 0, kind: input, shape index: {}]   ;;  %s1335_s1 = inlined_call_operand.vmem [shape: f32[40,5,32], index: 1, kind: input, shape index: {}]   ;;  %s1336_s2 = inlined_call_operand.vmem [shape: f32[40,5,32], index: 2, kind: output, shape index: {}]  }
   0x1 LB: > { %s844_s10 = sadd.s32 4294967295, %s963_s9   ;;  %p848_p0 = scmp.ge.s32.totalorder %s963_s9, 1  ;;  %s963_s9 = sphi %s982_s9, %s12_s9  }
   0x2   : > { %p123_p1 = scmp.lt.s32.totalorder %s963_s9, 5 }
   0x4   : > { %p124_p2 = pnand %p848_p0, %p123_p1 }
   0x5   : > { %s149_s11 = smul.u32 (!%p124_p2), 10, %s844_s10  ;;  %vm176_vm0 = vcmask (!%p124_p2), 258048   ;;  %v965_v20 = vmov (!%p124_p2), 0   ;;  %vm298_vm1 = vcmask (!%p124_p2), 261120  }
   0x6   : > { %127 = sbr.rel (%p124_p2) target bundleno = 641 (0x281), region = 28  ;;  %874 = vset.pattern.permute.xlu1 (!%p124_p2), %v965_v20  ;;  %873 = vset.pattern.permute.xlu0 (!%p124_p2), %v965_v20 }
   0x7   : > { %p150_p3 = scmp.lt.s32.totalorder (!%p124_p2), %s149_s11, 39 }
   0xd   : > { %s1338_s11 = smov (!%p150_p3, %s149_s11), 39 }
   0xe   : > { %s849_s12 = sshll.u32 %s1338_s11, 3  ;;  %s152_s18 = scalar_lea.vmem %s1334_s0, %s1338_s11 }
   0xf   : > { %s158_s15 = scalar_lea.vmem %s1335_s1, %s849_s12  ;;  %s1291_s21 = scalar_lea.vmem %s1336_s2, %s849_s12 }
  0x10   : > { %v998_v0 = vld [vmem:[%s158_s15 + $0x10] sm:$0x1f]  ;;  %v1000_v1 = vld [vmem:[%s158_s15] sm:$0x1f]  ;;  %v1002_v2 = vld [vmem:[%s158_s15 + $0x18] sm:$0x1f] }
  0x11   : > { %v183_v3 = vsel %vm176_vm0, %v998_v0, 0.0  ;;  %v177_v4 = vsel %vm176_vm0, %v1000_v1, 0.0  ;;  %v1008_v5 = vld [vmem:[%s158_s15 + $0x8] sm:$0x1f]  ;;  %v186_v6 = vsel %vm176_vm0, %v1002_v2, 0.0 }
  0x12   : > { %184 = vadd.xlane.f32.xlu1 %v183_v3  ;;  %178 = vadd.xlane.f32.xlu0 %v177_v4  ;;  %v180_v7 = vsel %vm176_vm0, %v1008_v5, 0.0  ;;  %v1014_v8 = vld [vmem:[%s158_s15 + $0x28] sm:$0x1f]  ;;  %v1016_v9 = vld [vmem:[%s158_s15 + $0x20] sm:$0x1f] }
  0x13   : > { %v192_v10 = vsel %vm176_vm0, %v1014_v8, 0.0  ;;  %v189_v11 = vsel %vm176_vm0, %v1016_v9, 0.0  ;;  %v1022_v12 = vld [vmem:[%s158_s15 + $0x38] sm:$0x1f]  ;;  %v1024_v13 = vld [vmem:[%s158_s15 + $0x30] sm:$0x1f] }
  0x14   : > { %v198_v14 = vsel %vm176_vm0, %v1022_v12, 0.0  ;;  %v195_v15 = vsel %vm176_vm0, %v1024_v13, 0.0  ;;  %v1030_v16 = vld [vmem:[%s158_s15 + $0x40] sm:$0x1f]  ;;  %v1032_v17 = vld [vmem:[%s158_s15 + $0x48] sm:$0x1f] }
  0x15   : > { %v201_v18 = vsel %vm176_vm0, %v1030_v16, 0.0  ;;  %v204_v19 = vsel %vm176_vm0, %v1032_v17, 0.0 }
  0x16   : > { %187 = vadd.xlane.f32.xlu1 %v186_v6  ;;  %181 = vadd.xlane.f32.xlu0 %v180_v7 }
  0x1a   : > { %193 = vadd.xlane.f32.xlu1 %v192_v10  ;;  %190 = vadd.xlane.f32.xlu0 %v189_v11 }
  0x1e   : > { %199 = vadd.xlane.f32.xlu1 %v198_v14  ;;  %196 = vadd.xlane.f32.xlu0 %v195_v15 }
  0x22   : > { %202 = vadd.xlane.f32.xlu0 %v201_v18  ;;  %205 = vadd.xlane.f32.xlu1 %v204_v19 }
  0x9f   : > { %v185_v21 = vpop.xlane.xlu1 %184  ;;  %v179_v22 = vpop.xlane.xlu0 %178 }
  0xa0   : > { %v210_v23 = vmul.f32 0.03125, %v185_v21  ;;  %v208_v24 = vmul.f32 0.03125, %v179_v22 }
  0xa2   : > { %v220_v25 = vmul.f32 %v210_v23, %v998_v0  ;;  %v218_v26 = vmul.f32 %v208_v24, %v1000_v1 }
  0xa3   : > { %v188_v27 = vpop.xlane.xlu1 %187  ;;  %v182_v28 = vpop.xlane.xlu0 %181 }
  0xa4   : > { %v242_v29 = vsel %vm176_vm0, %v220_v25, 0.0  ;;  %v228_v30 = vsel %vm176_vm0, %v218_v26, 0.0  ;;  %v211_v31 = vmul.f32 0.03125, %v188_v27  ;;  %v209_v32 = vmul.f32 0.03125, %v182_v28 }
  0xa5   : > { %v243_v33 = vrot.slane %v242_v29, 4  ;;  %v229_v34 = vrot.slane %v228_v30, 4 }
  0xa6   : > { %v221_v35 = vmul.f32 %v211_v31, %v1002_v2  ;;  %v219_v36 = vmul.f32 %v209_v32, %v1008_v5 }
  0xa7   : > { %v244_v37 = vadd.f32 %v243_v33, %v242_v29  ;;  %v230_v38 = vadd.f32 %v229_v34, %v228_v30  ;;  %v194_v39 = vpop.xlane.xlu1 %193  ;;  %v191_v40 = vpop.xlane.xlu0 %190 }
  0xa8   : > { %v249_v41 = vsel %vm176_vm0, %v221_v35, 0.0  ;;  %v235_v42 = vsel %vm176_vm0, %v219_v36, 0.0  ;;  %v213_v43 = vmul.f32 0.03125, %v194_v39  ;;  %v212_v44 = vmul.f32 0.03125, %v191_v40 }
  0xa9   : > { %v250_v45 = vrot.slane %v249_v41, 4  ;;  %v236_v46 = vrot.slane %v235_v42, 4  ;;  %v231_v47 = vrot.slane %v230_v38, 2  ;;  %v245_v48 = vrot.slane %v244_v37, 2 }
  0xaa   : > { %v223_v49 = vmul.f32 %v213_v43, %v1014_v8  ;;  %v222_v50 = vmul.f32 %v212_v44, %v1016_v9 }
  0xab   : > { %v251_v51 = vadd.f32 %v250_v45, %v249_v41  ;;  %v237_v52 = vadd.f32 %v236_v46, %v235_v42  ;;  %v200_v53 = vpop.xlane.xlu1 %199  ;;  %v197_v54 = vpop.xlane.xlu0 %196  ;;  %v232_v55 = vadd.f32 %v231_v47, %v230_v38  ;;  %v246_v56 = vadd.f32 %v245_v48, %v244_v37 }
  0xac   : > { %v263_v57 = vsel %vm176_vm0, %v223_v49, 0.0  ;;  %v256_v58 = vsel %vm176_vm0, %v222_v50, 0.0  ;;  %v215_v59 = vmul.f32 0.03125, %v200_v53  ;;  %v214_v60 = vmul.f32 0.03125, %v197_v54 }
  0xad   : > { %v264_v61 = vrot.slane %v263_v57, 4  ;;  %v257_v62 = vrot.slane %v256_v58, 4  ;;  %v233_v63 = vrot.slane %v232_v55, 1  ;;  %v247_v3 = vrot.slane %v246_v56, 1 }
  0xae   : > { %v225_v4 = vmul.f32 %v215_v59, %v1022_v12  ;;  %v224_v6 = vmul.f32 %v214_v60, %v1024_v13  ;;  %v238_v7 = vrot.slane %v237_v52, 2  ;;  %v252_v10 = vrot.slane %v251_v51, 2 }
  0xaf   : > { %v265_v11 = vadd.f32 %v264_v61, %v263_v57  ;;  %v258_v14 = vadd.f32 %v257_v62, %v256_v58  ;;  %v203_v15 = vpop.xlane.xlu0 %202  ;;  %v1052_v18 = vadd.f32 %v233_v63, %v232_v55  ;;  %v1054_v19 = vadd.f32 %v247_v3, %v246_v56 }
  0xb0   : > { %v277_v20 = vsel %vm176_vm0, %v225_v4, 0.0  ;;  %v270_v21 = vsel %vm176_vm0, %v224_v6, 0.0  ;;  %v216_v22 = vmul.f32 0.03125, %v203_v15  ;;  %v239_v23 = vadd.f32 %v238_v7, %v237_v52  ;;  %v500_v6 = vld [vmem:[%s152_s18 + $0x1] sm:$0x1] }
  0xb1   : > { %v278_v24 = vrot.slane %v277_v20, 4  ;;  %v271_v25 = vrot.slane %v270_v21, 4  ;;  %v299_v26 = vsel %vm298_vm1, %v1052_v18, 0.0  ;;  %v253_v29 = vadd.f32 %v252_v10, %v251_v51  ;;  %v501_v7 = vld [vmem:[%s152_s18 + $0x2] sm:$0x1] }
  0xb2   : > { %v226_v27 = vmul.f32 %v216_v22, %v1030_v16  ;;  %300 = vadd.xlane.f32.xlu0 %v299_v26  ;;  %v240_v28 = vrot.slane %v239_v23, 1  ;;  %v259_v30 = vrot.slane %v258_v14, 2  ;;  %v305_v33 = vsel %vm298_vm1, %v1054_v19, 0.0  ;;  %v499_v10 = vld [vmem:[%s152_s18] sm:$0x1] }
  0xb3   : > { %v279_v31 = vadd.f32 %v278_v24, %v277_v20  ;;  %v272_v32 = vadd.f32 %v271_v25, %v270_v21  ;;  %v266_v34 = vrot.slane %v265_v11, 2  ;;  %v254_v37 = vrot.slane %v253_v29, 1  ;;  %v1098_v15 = vld [vmem:[%s152_s18 + $0x4] sm:$0x1]  ;;  %v1102_v20 = vld [vmem:[%s152_s18 + $0x5] sm:$0x1]  ;;  %v206_v25 = vpop.xlane.xlu1 %205 }
  0xb4   : > { %v284_v35 = vsel %vm176_vm0, %v226_v27, 0.0  ;;  %v1064_v36 = vadd.f32 %v240_v28, %v239_v23  ;;  %v260_v38 = vadd.f32 %v259_v30, %v258_v14  ;;  %v1096_v14 = vld [vmem:[%s152_s18 + $0x9] sm:$0x1]  ;;  %v966_v21 = vmov 1   ;;  %v1105_v22 = vld [vmem:[%s152_s18 + $0x6] sm:$0x1] }
  0xb5   : > { %v285_v39 = vrot.slane %v284_v35, 4  ;;  %v267_v40 = vadd.f32 %v266_v34, %v265_v11  ;;  %v273_v41 = vrot.slane %v272_v32, 2  ;;  %v280_v42 = vrot.slane %v279_v31, 2  ;;  %v502_v11 = vld [vmem:[%s152_s18 + $0x3] sm:$0x1] }
  0xb6   : > { %306 = vadd.xlane.f32.xlu0 %v305_v33  ;;  %v302_v43 = vsel %vm298_vm1, %v1064_v36, 0.0  ;;  %v1068_v44 = vadd.f32 %v254_v37, %v253_v29  ;;  %v261_v45 = vrot.slane %v260_v38, 1  ;;  %v1108_v23 = vld [vmem:[%s152_s18 + $0x7] sm:$0x1]  ;;  %v1111_v24 = vld [vmem:[%s152_s18 + $0x8] sm:$0x1] }
  0xb7   : > { %v286_v46 = vadd.f32 %v285_v39, %v284_v35  ;;  %303 = vadd.xlane.f32.xlu1 %v302_v43  ;;  %v268_v47 = vrot.slane %v267_v40, 1  ;;  %v274_v48 = vadd.f32 %v273_v41, %v272_v32  ;;  %v281_v49 = vadd.f32 %v280_v42, %v279_v31 }
  0xb8   : > { %v1070_v50 = vadd.f32 %v261_v45, %v260_v38  ;;  %v308_v53 = vsel %vm298_vm1, %v1068_v44, 0.0  ;;  %v217_v26 = vmul.f32 0.03125, %v206_v25 }
  0xb9   : > { %v275_v51 = vrot.slane %v274_v48, 1  ;;  %v287_v52 = vrot.slane %v286_v46, 2  ;;  %v1076_v55 = vadd.f32 %v268_v47, %v267_v40  ;;  %v282_v56 = vrot.slane %v281_v49, 1 }
  0xba   : > { %v311_v54 = vsel %vm298_vm1, %v1070_v50, 0.0  ;;  %v227_v27 = vmul.f32 %v217_v26, %v1032_v17 }
  0xbb   : > { %309 = vadd.xlane.f32.xlu1 %v308_v53  ;;  %312 = vadd.xlane.f32.xlu0 %v311_v54  ;;  %v1078_v57 = vadd.f32 %v275_v51, %v274_v48  ;;  %v288_v58 = vadd.f32 %v287_v52, %v286_v46  ;;  %v314_v61 = vsel %vm298_vm1, %v1076_v55, 0.0  ;;  %v1084_v62 = vadd.f32 %v282_v56, %v281_v49 }
  0xbc   : > { %v291_v28 = vsel %vm176_vm0, %v227_v27, 0.0 }
  0xbd   : > { %v317_v59 = vsel %vm298_vm1, %v1078_v57, 0.0  ;;  %v289_v60 = vrot.slane %v288_v58, 1  ;;  %v320_v4 = vsel %vm298_vm1, %v1084_v62, 0.0  ;;  %v292_v29 = vrot.slane %v291_v28, 4 }
  0xbf   : > { %315 = vadd.xlane.f32.xlu1 %v314_v61  ;;  %318 = vadd.xlane.f32.xlu0 %v317_v59  ;;  %v1086_v63 = vadd.f32 %v289_v60, %v288_v58  ;;  %v293_v30 = vadd.f32 %v292_v29, %v291_v28 }
  0xc1   : > { %v323_v3 = vsel %vm298_vm1, %v1086_v63, 0.0  ;;  %v294_v31 = vrot.slane %v293_v30, 2 }
  0xc3   : > { %321 = vadd.xlane.f32.xlu1 %v320_v4  ;;  %324 = vadd.xlane.f32.xlu0 %v323_v3  ;;  %v295_v32 = vadd.f32 %v294_v31, %v293_v30 }
  0xc5   : > { %v296_v33 = vrot.slane %v295_v32, 1 }
  0xc7   : > { %v1116_v34 = vadd.f32 %v296_v33, %v295_v32 }
  0xc9   : > { %v326_v35 = vsel %vm298_vm1, %v1116_v34, 0.0 }
  0xd4   : > { %520 = vperm.xlu1 %874, %v500_v6  }
  0xd8   : > { %529 = vperm.xlu1 %874, %v501_v7  }
  0xd9   : > { %511 = vperm.xlu0 %873, %v499_v10  }
  0xdc   : > { %538 = vperm.xlu1 %874, %v502_v11  }
  0xdd   : > { %592 = vperm.xlu0 %873, %v1096_v14  }
  0xe0   : > { %547 = vperm.xlu1 %874, %v1098_v15  }
  0xe1   : > { %876 = vset.pattern.permute.xlu0 %v966_v21 }
  0xe2   : > { %618 = vperm.xlu0 %876, %v500_v6  }
  0xe4   : > { %556 = vperm.xlu1 %874, %v1102_v20  }
  0xe8   : > { %565 = vperm.xlu1 %874, %v1105_v22  }
  0xec   : > { %574 = vperm.xlu1 %874, %v1108_v23  }
  0xf0   : > { %583 = vperm.xlu1 %874, %v1111_v24  }
  0xf4   : > { %875 = vset.pattern.permute.xlu1 %v966_v21 }
  0xf5   : > { %610 = vperm.xlu1 %875, %v499_v10  }
  0xf9   : > { %626 = vperm.xlu1 %875, %v501_v7  }
 0x11d   : > { %327 = vadd.xlane.f32.xlu1 %v326_v35 }
 0x12e   : > { %634 = vperm.xlu1 %875, %v502_v11  }
 0x13f   : > { %v301_v37 = vpop.xlane.xlu0 %300 }
 0x140   : > { %v329_v38 = vmul.f32 0.03125, %v301_v37 }
 0x142   : > { %v1121_v39 = vsub.f32 %v1052_v18, %v329_v38 }
 0x143   : > { %v307_v40 = vpop.xlane.xlu0 %306 }
 0x144   : > { %v304_v41 = vpop.xlane.xlu1 %303  ;;  %v331_v42 = vmul.f32 0.03125, %v307_v40  ;;  %v349_v43 = vmul.f32 %v1121_v39, %v1121_v39 }
 0x145   : > { %v330_v45 = vmul.f32 0.03125, %v304_v41 }
 0x146   : > { %v1126_v46 = vsub.f32 %v1054_v19, %v331_v42  ;;  %v359_v47 = vsel %vm298_vm1, %v349_v43, 0.0 }
 0x147   : > { %360 = vadd.xlane.f32.xlu0 %v359_v47  ;;  %v1130_v48 = vsub.f32 %v1064_v36, %v330_v45 }
 0x148   : > { %v310_v49 = vpop.xlane.xlu1 %309  ;;  %v313_v51 = vpop.xlane.xlu0 %312  ;;  %v351_v18 = vmul.f32 %v1126_v46, %v1126_v46 }
 0x149   : > { %v332_v52 = vmul.f32 0.03125, %v310_v49  ;;  %v333_v53 = vmul.f32 0.03125, %v313_v51  ;;  %v350_v36 = vmul.f32 %v1130_v48, %v1130_v48 }
 0x14a   : > { %v365_v54 = vsel %vm298_vm1, %v351_v18, 0.0 }
 0x14b   : > { %v1136_v56 = vsub.f32 %v1070_v50, %v333_v53  ;;  %366 = vadd.xlane.f32.xlu0 %v365_v54  ;;  %v1139_v19 = vsub.f32 %v1068_v44, %v332_v52  ;;  %v362_v44 = vsel %vm298_vm1, %v350_v36, 0.0 }
 0x14c   : > { %v316_v58 = vpop.xlane.xlu1 %315  ;;  %v319_v59 = vpop.xlane.xlu0 %318 }
 0x14d   : > { %v334_v60 = vmul.f32 0.03125, %v316_v58  ;;  %v335_v61 = vmul.f32 0.03125, %v319_v59  ;;  %v353_v3 = vmul.f32 %v1136_v56, %v1136_v56  ;;  %v352_v10 = vmul.f32 %v1139_v19, %v1139_v19 }
 0x14f   : > { %v1146_v4 = vsub.f32 %v1078_v57, %v335_v61  ;;  %v371_v50 = vsel %vm298_vm1, %v353_v3, 0.0  ;;  %v1153_v11 = vsub.f32 %v1076_v55, %v334_v60  ;;  %v368_v29 = vsel %vm298_vm1, %v352_v10, 0.0 }
 0x150   : > { %v322_v6 = vpop.xlane.xlu1 %321  ;;  %v325_v7 = vpop.xlane.xlu0 %324  ;;  %372 = vadd.xlane.f32.xlu0 %v371_v50 }
 0x151   : > { %v336_v21 = vmul.f32 0.03125, %v322_v6  ;;  %v337_v25 = vmul.f32 0.03125, %v325_v7  ;;  %v355_v26 = vmul.f32 %v1146_v4, %v1146_v4  ;;  %v354_v30 = vmul.f32 %v1153_v11, %v1153_v11 }
 0x152   : > { %363 = vadd.xlane.f32.xlu1 %v362_v44 }
 0x153   : > { %v1158_v57 = vsub.f32 %v1086_v63, %v337_v25  ;;  %v377_v27 = vsel %vm298_vm1, %v355_v26, 0.0  ;;  %v1162_v28 = vsub.f32 %v1084_v62, %v336_v21  ;;  %v374_v63 = vsel %vm298_vm1, %v354_v30, 0.0 }
 0x154   : > { %378 = vadd.xlane.f32.xlu0 %v377_v27  ;;  %v1176_v33 = vpop.permute.xlu1 %520 }
 0x155   : > { %v357_v55 = vmul.f32 %v1158_v57, %v1158_v57  ;;  %v356_v32 = vmul.f32 %v1162_v28, %v1162_v28 }
 0x156   : > { %369 = vadd.xlane.f32.xlu1 %v368_v29 }
 0x157   : > { %v383_v31 = vsel %vm298_vm1, %v357_v55, 0.0  ;;  %v380_v62 = vsel %vm298_vm1, %v356_v32, 0.0 }
 0x158   : > { %384 = vadd.xlane.f32.xlu0 %v383_v31  ;;  %v1179_v35 = vpop.permute.xlu1 %529  ;;  %v1204_v51 = vpop.permute.xlu0 %511 }
 0x15a   : > { %375 = vadd.xlane.f32.xlu1 %v374_v63 }
 0x15c   : > { %v1182_v37 = vpop.permute.xlu1 %538  ;;  %v1208_v18 = vpop.permute.xlu0 %592 }
 0x15e   : > { %381 = vadd.xlane.f32.xlu1 %v380_v62 }
 0x160   : > { %v1184_v38 = vpop.permute.xlu1 %547 }
 0x161   : > { %v1210_v52 = vpop.permute.xlu0 %618 }
 0x164   : > { %v1186_v40 = vpop.permute.xlu1 %556 }
 0x168   : > { %v1188_v41 = vpop.permute.xlu1 %565 }
 0x16c   : > { %v1190_v42 = vpop.permute.xlu1 %574 }
 0x16e   : > { %642 = vperm.xlu0 %876, %v1098_v15  }
 0x16f   : > { %650 = vperm.xlu1 %875, %v1102_v20  }
 0x170   : > { %v1192_v15 = vpop.permute.xlu1 %583 }
 0x172   : > { %658 = vperm.xlu0 %876, %v1105_v22  }
 0x174   : > { %v1194_v20 = vpop.permute.xlu1 %610 }
 0x176   : > { %674 = vperm.xlu0 %876, %v1111_v24  }
 0x178   : > { %v1196_v43 = vpop.permute.xlu1 %626 }
 0x1aa   : > { %v328_v22 = vpop.xlane.xlu1 %327 }
 0x1ab   : > { %v338_v45 = vmul.f32 0.03125, %v328_v22 }
 0x1ad   : > { %v1199_v24 = vsub.f32 %v1116_v34, %v338_v45 }
 0x1ae   : > { %v1212_v59 = vpop.permute.xlu1 %634 }
 0x1af   : > { %v358_v47 = vmul.f32 %v1199_v24, %v1199_v24 }
 0x1b1   : > { %v386_v49 = vsel %vm298_vm1, %v358_v47, 0.0 }
 0x1b2   : > { %387 = vadd.xlane.f32.xlu1 %v386_v49 }
 0x1c3   : > { %666 = vperm.xlu1 %875, %v1108_v23  }
 0x1c7   : > { %682 = vperm.xlu1 %875, %v1096_v14   ;;  %v514_v14 = vlaneseq }
 0x1c9   : > { %v515_v55 = vshrl.u32 %v514_v14, 7 }
 0x1d4   : > { %v361_v53 = vpop.xlane.xlu0 %360 }
 0x1d5   : > { %v389_v54 = vmul.f32 0.032258064, %v361_v53  ;;  %v1225_v53 = vsub.s32 0, %v515_v55 }
 0x1d7   : > { %877 = vrsqrt.f32 %v389_v54  ;;  %vm401_vm2 = vcmp.eq.f32.partialorder %v389_v54, inf  ;;  %v404_v44 = vand.u32 2147483648, %v389_v54  ;;  %vm403_vm3 = vcmp.eq.f32.partialorder %v389_v54, 0.0 }
 0x1d8   : > { %v367_v34 = vpop.xlane.xlu0 %366 }
 0x1d9   : > { %v391_v58 = vmul.f32 0.032258064, %v367_v34 }
 0x1db   : > { %879 = vrsqrt.f32 %v391_v58  ;;  %vm415_vm4 = vcmp.eq.f32.partialorder %v391_v58, inf  ;;  %v418_v32 = vand.u32 2147483648, %v391_v58  ;;  %vm417_vm5 = vcmp.eq.f32.partialorder %v391_v58, 0.0 }
 0x1dd   : > { %v373_v36 = vpop.xlane.xlu0 %372 }
 0x1de   : > { %v393_v60 = vmul.f32 0.032258064, %v373_v36  ;;  %v535_v36 = vrot.slane %v1179_v35, %v1225_v53 }
 0x1df   : > { %v364_v61 = vpop.xlane.xlu1 %363 }
 0x1e0   : > { %881 = vrsqrt.f32 %v393_v60  ;;  %v390_v23 = vmul.f32 0.032258064, %v364_v61  ;;  %vm429_vm6 = vcmp.eq.f32.partialorder %v393_v60, inf  ;;  %v432_v14 = vand.u32 2147483648, %v393_v60 }
 0x1e1   : > { %v878_v3 = vpop.eup %877  ;;  %v379_v50 = vpop.xlane.xlu0 %378  ;;  %vm431_vm7 = vcmp.eq.f32.partialorder %v393_v60, 0.0 }
 0x1e2   : > { %v400_v6 = vmul.f32 %v878_v3, %v389_v54  ;;  %v1214_v7 = vmul.f32 0.032258064, %v379_v50  ;;  %883 = vrsqrt.f32 %v390_v23  ;;  %v517_v3 = vrot.slane %v1204_v51, %v1225_v53 }
 0x1e3   : > { %v370_v10 = vpop.xlane.xlu1 %369  ;;  %vm408_vm8 = vcmp.eq.f32.partialorder %v390_v23, inf  ;;  %vm410_vm9 = vcmp.eq.f32.partialorder %v390_v23, 0.0 }
 0x1e4   : > { %v402_v21 = vsel %vm401_vm2, %v389_v54, %v400_v6  ;;  %885 = vrsqrt.f32 %v1214_v7  ;;  %v1217_v27 = vmul.f32 0.032258064, %v370_v10  ;;  %v411_v10 = vand.u32 2147483648, %v390_v23 }
 0x1e5   : > { %v880_v25 = vpop.eup %879  ;;  %v405_v26 = vsel %vm403_vm3, %v404_v44, %v402_v21  ;;  %v385_v29 = vpop.xlane.xlu0 %384  ;;  %vm443_vm10 = vcmp.eq.f32.partialorder %v1214_v7, inf  ;;  %vm445_vm11 = vcmp.eq.f32.partialorder %v1214_v7, 0.0 }
 0x1e6   : > { %v469_v30 = vadd.f32 1e-05, %v405_v26  ;;  %v414_v31 = vmul.f32 %v880_v25, %v391_v58  ;;  %v1219_v63 = vmul.f32 0.032258064, %v385_v29  ;;  %887 = vrsqrt.f32 %v1217_v27 }
 0x1e7   : > { %v376_v62 = vpop.xlane.xlu1 %375  ;;  %vm422_vm12 = vcmp.eq.f32.partialorder %v1217_v27, inf  ;;  %vm424_vm13 = vcmp.eq.f32.partialorder %v1217_v27, 0.0 }
 0x1e8   : > { %889 = vrcp.f32 %v469_v30  ;;  %v416_v22 = vsel %vm415_vm4, %v391_v58, %v414_v31  ;;  %v1223_v47 = vmul.f32 0.032258064, %v376_v62  ;;  %v616_v58 = vrot.slane %v1194_v20, %v1225_v53 }
 0x1e9   : > { %v419_v45 = vsel %vm417_vm5, %v418_v32, %v416_v22  ;;  %891 = vrsqrt.f32 %v1219_v63  ;;  %v446_v20 = vand.u32 2147483648, %v1214_v7  ;;  %v425_v22 = vand.u32 2147483648, %v1217_v27 }
 0x1ea   : > { %v882_v49 = vpop.eup %881  ;;  %v471_v54 = vadd.f32 1e-05, %v419_v45  ;;  %893 = vrsqrt.f32 %v1223_v47  ;;  %vm457_vm14 = vcmp.eq.f32.partialorder %v1219_v63, inf  ;;  %vm459_vm15 = vcmp.eq.f32.partialorder %v1219_v63, 0.0 }
 0x1eb   : > { %v428_v34 = vmul.f32 %v882_v49, %v393_v60  ;;  %vm436_vm1 = vcmp.eq.f32.partialorder %v1223_v47, inf  ;;  %vm438_vm2 = vcmp.eq.f32.partialorder %v1223_v47, 0.0 }
 0x1ec   : > { %895 = vrcp.f32 %v471_v54  ;;  %v884_v61 = vpop.eup %883 }
 0x1ed   : > { %v430_v50 = vsel %vm429_vm6, %v393_v60, %v428_v34  ;;  %v407_v44 = vmul.f32 %v884_v61, %v390_v23 }
 0x1ee   : > { %v886_v6 = vpop.eup %885  ;;  %v433_v35 = vsel %vm431_vm7, %v432_v14, %v430_v50  ;;  %v460_v50 = vand.u32 2147483648, %v1219_v63 }
 0x1ef   : > { %v442_v21 = vmul.f32 %v886_v6, %v1214_v7  ;;  %v409_v25 = vsel %vm408_vm8, %v390_v23, %v407_v44  ;;  %v473_v26 = vadd.f32 1e-05, %v433_v35  ;;  %v439_v35 = vand.u32 2147483648, %v1223_v47 }
 0x1f0   : > { %v888_v51 = vpop.eup %887  ;;  %v412_v29 = vsel %vm410_vm9, %v411_v10, %v409_v25 }
 0x1f1   : > { %v444_v55 = vsel %vm443_vm10, %v1214_v7, %v442_v21  ;;  %v470_v30 = vadd.f32 1e-05, %v412_v29  ;;  %v421_v31 = vmul.f32 %v888_v51, %v1217_v27  ;;  %897 = vrcp.f32 %v473_v26 }
 0x1f2   : > { %v890_v60 = vpop.eup %889  ;;  %v447_v32 = vsel %vm445_vm11, %v446_v20, %v444_v55 }
 0x1f3   : > { %v892_v23 = vpop.eup %891  ;;  %v489_v62 = vmul.f32 %v890_v60, %v1121_v39  ;;  %v475_v45 = vadd.f32 1e-05, %v447_v32  ;;  %899 = vrcp.f32 %v470_v30  ;;  %v423_v7 = vsel %vm422_vm12, %v1217_v27, %v421_v31 }
 0x1f4   : > { %v456_v49 = vmul.f32 %v892_v23, %v1219_v63  ;;  %v894_v54 = vpop.eup %893  ;;  %v426_v61 = vsel %vm424_vm13, %v425_v22, %v423_v7  ;;  %v553_v60 = vrot.slane %v1184_v38, %v1225_v53  ;;  %v571_v38 = vrot.slane %v1188_v41, %v1225_v53 }
 0x1f5   : > { %v599_v34 = vmul.f32 %v517_v3, %v489_v62  ;;  %901 = vrcp.f32 %v475_v45  ;;  %v472_v14 = vadd.f32 1e-05, %v426_v61  ;;  %v435_v44 = vmul.f32 %v894_v54, %v1223_v47  ;;  %v643_v3 = vpop.permute.xlu0 %642  ;;  %v382_v45 = vpop.xlane.xlu1 %381 }
 0x1f6   : > { %v896_v39 = vpop.eup %895  ;;  %v458_v6 = vsel %vm457_vm14, %v1219_v63, %v456_v49  ;;  %v632_v63 = vrot.slane %v1196_v43, %v1225_v53  ;;  %v526_v43 = vrot.slane %v1176_v33, %v1225_v53  ;;  %v624_v62 = vrot.slane %v1210_v52, %v1225_v53 }
 0x1f7   : > { %v689_v10 = vadd.f32 %v616_v58, %v599_v34  ;;  %v491_v21 = vmul.f32 %v896_v39, %v1126_v46  ;;  %v461_v25 = vsel %vm459_vm15, %v460_v50, %v458_v6  ;;  %903 = vrcp.f32 %v472_v14 }
 0x1f8   : > { %v437_v27 = vsel %vm436_vm1, %v1223_v47, %v435_v44  ;;  %v477_v20 = vadd.f32 1e-05, %v461_v25  ;;  %v648_v47 = vrot.slane %v643_v3, %v1225_v53  ;;  %v544_v50 = vrot.slane %v1182_v37, %v1225_v53 }
 0x1f9   : > { %v851_v26 = vmul.f32 -1.442695, %v689_v10  ;;  %v601_v51 = vmul.f32 %v535_v36, %v491_v21  ;;  %v440_v29 = vsel %vm438_vm2, %v439_v35, %v437_v27  ;;  %v659_v32 = vpop.permute.xlu0 %658  ;;  %v589_v41 = vrot.slane %v1192_v15, %v1225_v53  ;;  %v651_v3 = vpop.permute.xlu1 %650 }
 0x1fa   : > { %v474_v55 = vadd.f32 1e-05, %v440_v29  ;;  %905 = vrcp.f32 %v477_v20  ;;  %v664_v49 = vrot.slane %v659_v32, %v1225_v53 }
 0x1fb   : > { %907 = vpow2.f32 %v851_v26  ;;  %v691_v46 = vadd.f32 %v632_v63, %v601_v51  ;;  %v898_v58 = vpop.eup %897  ;;  %v656_v51 = vrot.slane %v651_v3, %v1225_v53 }
 0x1fc   : > { %909 = vrcp.f32 %v474_v55  ;;  %v493_v31 = vmul.f32 %v898_v58, %v1136_v56 }
 0x1fd   : > { %v853_v30 = vmul.f32 -1.442695, %v691_v46  ;;  %v900_v23 = vpop.eup %899  ;;  %v675_v14 = vpop.permute.xlu0 %674 }
 0x1fe   : > { %v490_v22 = vmul.f32 %v900_v23, %v1130_v48  ;;  %v603_v7 = vmul.f32 %v553_v60, %v493_v31  ;;  %v680_v63 = vrot.slane %v675_v14, %v1225_v53 }
 0x1ff   : > { %v902_v36 = vpop.eup %901  ;;  %911 = vpow2.f32 %v853_v30 }
 0x200   : > { %v495_v56 = vmul.f32 %v902_v36, %v1146_v4  ;;  %v600_v54 = vmul.f32 %v526_v43, %v490_v22  ;;  %v693_v34 = vadd.f32 %v648_v47, %v603_v7  ;;  %v640_v4 = vrot.slane %v1212_v59, %v1225_v53 }
 0x201   : > { %v904_v61 = vpop.eup %903 }
 0x202   : > { %v605_v33 = vmul.f32 %v571_v38, %v495_v56  ;;  %v690_v52 = vadd.f32 %v624_v62, %v600_v54  ;;  %v492_v39 = vmul.f32 %v904_v61, %v1139_v19  ;;  %v855_v48 = vmul.f32 -1.442695, %v693_v34 }
 0x203   : > { %v562_v19 = vrot.slane %v1186_v40, %v1225_v53  ;;  %v396_v62 = vmul.f32 0.032258064, %v382_v45 }
 0x204   : > { %v906_v6 = vpop.eup %905  ;;  %v695_v44 = vadd.f32 %v664_v49, %v605_v33  ;;  %v852_v21 = vmul.f32 -1.442695, %v690_v52  ;;  %v602_v35 = vmul.f32 %v544_v50, %v492_v39  ;;  %913 = vpow2.f32 %v855_v48 }
 0x205   : > { %v908_v10 = vpop.eup %907  ;;  %v497_v37 = vmul.f32 %v906_v6, %v1158_v57  ;;  %vm450_vm3 = vcmp.eq.f32.partialorder %v396_v62, inf  ;;  %vm452_vm4 = vcmp.eq.f32.partialorder %v396_v62, 0.0 }
 0x206   : > { %v910_v25 = vpop.eup %909  ;;  %v729_v27 = vadd.f32 1.0, %v908_v10  ;;  %v857_v20 = vmul.f32 -1.442695, %v695_v44  ;;  %915 = vpow2.f32 %v852_v21  ;;  %v692_v15 = vadd.f32 %v640_v4, %v602_v35 }
 0x207   : > { %v494_v59 = vmul.f32 %v910_v25, %v1153_v11  ;;  %v607_v26 = vmul.f32 %v589_v41, %v497_v37 }
 0x208   : > { %917 = vrcp.f32 %v729_v27  ;;  %v854_v55 = vmul.f32 -1.442695, %v692_v15 }
 0x209   : > { %v912_v29 = vpop.eup %911  ;;  %v604_v57 = vmul.f32 %v562_v19, %v494_v59  ;;  %919 = vpow2.f32 %v857_v20  ;;  %v697_v46 = vadd.f32 %v680_v63, %v607_v26 }
 0x20a   : > { %v731_v58 = vadd.f32 1.0, %v912_v29  ;;  %921 = vpow2.f32 %v854_v55 }
 0x20b   : > { %v694_v40 = vadd.f32 %v656_v51, %v604_v57  ;;  %v859_v60 = vmul.f32 -1.442695, %v697_v46 }
 0x20c   : > { %923 = vrcp.f32 %v731_v58  ;;  %v598_v58 = vrot.slane %v1208_v18, %v1225_v53 }
 0x20d   : > { %v856_v30 = vmul.f32 -1.442695, %v694_v40  ;;  %925 = vpow2.f32 %v859_v60 }
 0x20e   : > { %v914_v31 = vpop.eup %913 }
 0x20f   : > { %927 = vpow2.f32 %v856_v30  ;;  %v733_v11 = vadd.f32 1.0, %v914_v31 }
 0x210   : > { %v916_v47 = vpop.eup %915 }
 0x211   : > { %v730_v23 = vadd.f32 1.0, %v916_v47  ;;  %929 = vrcp.f32 %v733_v11 }
 0x212   : > { %v918_v32 = vpop.eup %917 }
 0x213   : > { %v920_v43 = vpop.eup %919  ;;  %v759_v36 = vmul.f32 %v918_v32, %v1000_v1  ;;  %931 = vrcp.f32 %v730_v23 }
 0x214   : > { %v735_v22 = vadd.f32 1.0, %v920_v43  ;;  %v922_v7 = vpop.eup %921 }
 0x215   : > { %769 = vst.msk [vmem:[%s1291_s21] sm:$0x1f] %vm176_vm0, %v759_v36  ;;  %v732_v56 = vadd.f32 1.0, %v922_v7 }
 0x216   : > { %v924_v38 = vpop.eup %923  ;;  %933 = vrcp.f32 %v735_v22 }
 0x217   : > { %v926_v49 = vpop.eup %925  ;;  %v761_v54 = vmul.f32 %v924_v38, %v998_v0  ;;  %935 = vrsqrt.f32 %v396_v62 }
 0x218   : > { %937 = vrcp.f32 %v732_v56  ;;  %v737_v34 = vadd.f32 1.0, %v926_v49 }
 0x219   : > { %v928_v61 = vpop.eup %927  ;;  %771 = vst.msk [vmem:[%s1291_s21 + $0x10] sm:$0x1f] %vm176_vm0, %v761_v54 }
 0x21a   : > { %v734_v1 = vadd.f32 1.0, %v928_v61  ;;  %939 = vrcp.f32 %v737_v34 }
 0x21b   : > { %v930_v45 = vpop.eup %929 }
 0x21c   : > { %941 = vrcp.f32 %v734_v1  ;;  %v763_v33 = vmul.f32 %v930_v45, %v1016_v9 }
 0x21d   : > { %v932_v50 = vpop.eup %931 }
 0x21e   : > { %v760_v52 = vmul.f32 %v932_v50, %v1008_v5  ;;  %773 = vst.msk [vmem:[%s1291_s21 + $0x20] sm:$0x1f] %vm176_vm0, %v763_v33 }
 0x220   : > { %v934_v0 = vpop.eup %933  ;;  %770 = vst.msk [vmem:[%s1291_s21 + $0x8] sm:$0x1f] %vm176_vm0, %v760_v52 }
 0x221   : > { %v936_v39 = vpop.eup %935  ;;  %v765_v48 = vmul.f32 %v934_v0, %v1024_v13  ;;  %v453_v13 = vand.u32 2147483648, %v396_v62 }
 0x222   : > { %v938_v14 = vpop.eup %937  ;;  %v449_v9 = vmul.f32 %v936_v39, %v396_v62 }
 0x223   : > { %v762_v6 = vmul.f32 %v938_v14, %v1002_v2  ;;  %775 = vst.msk [vmem:[%s1291_s21 + $0x30] sm:$0x1f] %vm176_vm0, %v765_v48 }
 0x224   : > { %v940_v41 = vpop.eup %939  ;;  %v451_v10 = vsel %vm450_vm3, %v396_v62, %v449_v9 }
 0x225   : > { %772 = vst.msk [vmem:[%s1291_s21 + $0x18] sm:$0x1f] %vm176_vm0, %v762_v6  ;;  %v767_v5 = vmul.f32 %v940_v41, %v1030_v16  ;;  %v454_v2 = vsel %vm452_vm4, %v453_v13, %v451_v10  ;;  %v580_v16 = vrot.slane %v1190_v42, %v1225_v53 }
 0x226   : > { %v942_v4 = vpop.eup %941  ;;  %v476_v21 = vadd.f32 1e-05, %v454_v2 }
 0x227   : > { %v764_v44 = vmul.f32 %v942_v4, %v1014_v8  ;;  %777 = vst.msk [vmem:[%s1291_s21 + $0x40] sm:$0x1f] %vm176_vm0, %v767_v5 }
 0x228   : > { %943 = vrcp.f32 %v476_v21 }
 0x229   : > { %774 = vst.msk [vmem:[%s1291_s21 + $0x28] sm:$0x1f] %vm176_vm0, %v764_v44 }
 0x232   : > { %v944_v35 = vpop.eup %943 }
 0x233   : > { %v496_v25 = vmul.f32 %v944_v35, %v1162_v28 }
 0x235   : > { %v606_v19 = vmul.f32 %v580_v16, %v496_v25 }
 0x23f   : > { %v388_v3 = vpop.xlane.xlu1 %387 }
 0x240   : > { %v398_v37 = vmul.f32 0.032258064, %v388_v3 }
 0x242   : > { %945 = vrsqrt.f32 %v398_v37  ;;  %vm464_vm5 = vcmp.eq.f32.partialorder %v398_v37, inf  ;;  %v467_v26 = vand.u32 2147483648, %v398_v37  ;;  %vm466_vm6 = vcmp.eq.f32.partialorder %v398_v37, 0.0 }
 0x243   : > { %v667_v8 = vpop.permute.xlu1 %666 }
 0x244   : > { %v672_v27 = vrot.slane %v667_v8, %v1225_v53 }
 0x246   : > { %v696_v20 = vadd.f32 %v672_v27, %v606_v19 }
 0x247   : > { %v683_v46 = vpop.permute.xlu1 %682 }
 0x248   : > { %v858_v63 = vmul.f32 -1.442695, %v696_v20  ;;  %v688_v30 = vrot.slane %v683_v46, %v1225_v53 }
 0x24a   : > { %947 = vpow2.f32 %v858_v63 }
 0x24c   : > { %v946_v15 = vpop.eup %945 }
 0x24d   : > { %v463_v59 = vmul.f32 %v946_v15, %v398_v37 }
 0x24f   : > { %v465_v51 = vsel %vm464_vm5, %v398_v37, %v463_v59 }
 0x250   : > { %v468_v29 = vsel %vm466_vm6, %v467_v26, %v465_v51 }
 0x251   : > { %v478_v28 = vadd.f32 1e-05, %v468_v29 }
 0x253   : > { %949 = vrcp.f32 %v478_v28 }
 0x254   : > { %v948_v55 = vpop.eup %947 }
 0x255   : > { %v736_v42 = vadd.f32 1.0, %v948_v55 }
 0x257   : > { %951 = vrcp.f32 %v736_v42 }
 0x25d   : > { %v950_v57 = vpop.eup %949 }
 0x25e   : > { %v498_v40 = vmul.f32 %v950_v57, %v1199_v24 }
 0x260   : > { %v608_v60 = vmul.f32 %v598_v58, %v498_v40 }
 0x261   : > { %v952_v31 = vpop.eup %951 }
 0x262   : > { %v766_v11 = vmul.f32 %v952_v31, %v1022_v12  ;;  %v698_v47 = vadd.f32 %v688_v30, %v608_v60 }
 0x264   : > { %776 = vst.msk [vmem:[%s1291_s21 + $0x38] sm:$0x1f] %vm176_vm0, %v766_v11  ;;  %v860_v32 = vmul.f32 -1.442695, %v698_v47 }
 0x266   : > { %953 = vpow2.f32 %v860_v32 }
 0x270   : > { %v954_v23 = vpop.eup %953 }
 0x271   : > { %v738_v43 = vadd.f32 1.0, %v954_v23 }
 0x273   : > { %955 = vrcp.f32 %v738_v43 }
 0x27d   : > { %v956_v36 = vpop.eup %955 }
 0x27e   : > { %v768_v62 = vmul.f32 %v956_v36, %v1032_v17 }
 0x280   : > { %778 = vst.msk [vmem:[%s1291_s21 + $0x48] sm:$0x1f] %vm176_vm0, %v768_v62 }
 0x281 PF: > { %s12_s9 = sadd.s32 1, %s963_s9  }
 0x282   : > { %p9_p4 = scmp.ge.s32.totalorder %s12_s9, 6  }
 0x284   :  { %11 = sbr.rel (!%p9_p4) target bundleno = 1 (0x1), region = 61 }

</bundles_post_ra>
